<compile_context>
chip_gen: v7x
topology: tpu7x:2x2x1
jax: 0.10.0
libtpu: 0.0.40
codegen_flags: <defaults>
</compile_context>

<pallas_src>
import functools

import jax
import jax.numpy as jnp
from jax.experimental import pallas as pl
from jax.experimental.pallas import tpu as pltpu

_MIB = 1024 * 1024


def _round_up(x: int, m: int) -> int:
    return (x + m - 1) // m * m


def _cdiv(a: int, b: int) -> int:
    return (a + b - 1) // b


def _fit_tile(dim: int, base_tile: int, mult: int) -> int:
    """Largest tile <= base_tile (a multiple of `mult`) minimizing padding waste."""
    dim = max(int(dim), 1)
    tile = max(min(base_tile, _round_up(dim, mult)), mult)
    n_blocks = _cdiv(dim, tile)
    return _round_up(_cdiv(dim, n_blocks), mult)


def _tpu_generation() -> str:
    try:
        kind = jax.devices()[0].device_kind.lower()
    except Exception:
        return "unknown"
    if "v7" in kind or "7x" in kind:
        return "v7x"
    if "v6" in kind or "trillium" in kind:
        return "v6e"
    if "v5" in kind and ("lite" in kind or "v5e" in kind):
        return "v5e"
    if "v5" in kind:
        return "v5p"
    return "unknown"


# (tm, tn, tk, vmem_limit_cap_bytes, num_tensorcores)
_GEN_TILES = {
    "v5e": (512, 1024, 512, 96 * _MIB, 1),
    "v5p": (512, 1024, 512, 96 * _MIB, 1),
    "v6e": (1536, 1536, 512, 100 * _MIB, 1),
    "v7x": (1024, 1024, 512, 48 * _MIB, 2),
    "unknown": (512, 1024, 512, 32 * _MIB, 1),
}


def _linear_kernel(x_ref, w_ref, o_ref, acc_ref):
    """One (tm, tn) output tile; grid axis 2 is the K reduction."""
    k = pl.program_id(2)
    prod = jnp.dot(x_ref[...], w_ref[...], preferred_element_type=jnp.float32)

    @pl.when(k == 0)
    def _():
        acc_ref[...] = prod  # first step: write, no zero + reload

    @pl.when(k != 0)
    def _():
        acc_ref[...] += prod

    @pl.when(k == pl.num_programs(2) - 1)
    def _():
        o_ref[...] = acc_ref[...].astype(o_ref.dtype)


@functools.partial(jax.jit, static_argnames=("tm", "tn", "tk", "vmem_limit"))
def _pallas_matmul_padded(x2d_p, w_p, tm, tn, tk, vmem_limit):
    """x2d_p: (Mp, Kp) bf16, w_p: (Kp, Np) bf16, all dims divisible by tiles."""
    Mp, Kp = x2d_p.shape
    _, Np = w_p.shape
    grid = (Mp // tm, Np // tn, Kp // tk)

    # Account for operand re-streaming across the j / i grid axes.
    cost = pl.CostEstimate(
        flops=2 * Mp * Np * Kp,
        transcendentals=0,
        bytes_accessed=2 * (grid[1] * Mp * Kp + grid[0] * Kp * Np + Mp * Np),
    )

    return pl.pallas_call(
        _linear_kernel,
        out_shape=jax.ShapeDtypeStruct((Mp, Np), x2d_p.dtype),
        grid_spec=pltpu.PrefetchScalarGridSpec(
            num_scalar_prefetch=0,
            grid=grid,
            in_specs=[
                pl.BlockSpec((tm, tk), lambda i, j, k: (i, k)),  # x tile (M, K)
                pl.BlockSpec((tk, tn), lambda i, j, k: (k, j)),  # W^T tile (K, N)
            ],
            out_specs=pl.BlockSpec((tm, tn), lambda i, j, k: (i, j)),
            scratch_shapes=[pltpu.VMEM((tm, tn), jnp.float32)],
        ),
        compiler_params=pltpu.CompilerParams(
            dimension_semantics=("parallel", "parallel", "arbitrary"),
            vmem_limit_bytes=int(vmem_limit),
        ),
        cost_estimate=cost,
    )(x2d_p, w_p)


@functools.partial(
    jax.jit,
    static_argnames=("n_valid", "tm", "tn", "tk", "vmem_limit", "multi_core"),
)
def pallas_linear(x, weight_t_padded, *, n_valid, tm, tn, tk, vmem_limit,
                  multi_core=False):
    """y = x @ W^T with W^T pre-transposed/pre-padded to (Kp, Np)."""
    *lead, K = x.shape
    Kp, Np = weight_t_padded.shape
    x2d = x.reshape(-1, K)
    M = x2d.shape[0]

    # M tile: clamp to problem size with minimal padding waste (bf16 -> 16 rows).
    tm_e = _fit_tile(M, tm, 16)
    Mp = _round_up(M, tm_e)

    # Guarantee >=2 blocks along a parallel axis on dual-TensorCore chips when
    # the M axis collapses to a single block (decode-style shapes).
    tn_e = tn
    if (multi_core and Mp // tm_e == 1 and Np // tn_e == 1
            and tn_e % 256 == 0 and Np >= 256):
        tn_e = tn_e // 2

    if (Mp, Kp) != (M, K):
        x2d = jnp.pad(x2d, ((0, Mp - M), (0, Kp - K)))

    out2d = _pallas_matmul_padded(x2d, weight_t_padded, tm_e, tn_e, tk, vmem_limit)
    out2d = out2d[:M, :n_valid]
    return out2d.reshape(*lead, n_valid)


class LinearPallas:
    """Mirror of the PyTorch module: weight (out_features, in_features), bf16, no bias."""

    dtype = jnp.bfloat16

    def __init__(self, in_features: int, out_features: int, bias: bool = False, key=None):
        assert not bias, "reference module defaults to bias=False"
        self.in_features = in_features
        self.out_features = out_features
        key = key if key is not None else jax.random.PRNGKey(0)
        # Deterministic synthetic init (the torch module uses torch.empty; any
        # deterministic values are fine here).
        self.weight = (
            jax.random.normal(key, (out_features, in_features), jnp.float32) * 0.02
        ).astype(LinearPallas.dtype)

        # Generation-specific tile plan (K/N tiles depend only on static shapes).
        gen = _tpu_generation()
        tm, tn, tk, vmem_cap, n_cores = _GEN_TILES.get(gen, _GEN_TILES["unknown"])
        self._tm = tm
        self._tn = _fit_tile(out_features, tn, 128)
        self._tk = _fit_tile(in_features, tk, 128)
        Kp = _round_up(in_features, self._tk)
        Np = _round_up(out_features, self._tn)

        # Live-VMEM estimate: double-buffered bf16 x/W/out tiles + f32 accumulator.
        est = (2 * 2 * (tm * self._tk + self._tk * self._tn + tm * self._tn)
               + 4 * tm * self._tn)
        self._vmem_limit = int(min(vmem_cap, max(2 * est, 32 * _MIB)))
        self._multi_core = n_cores >= 2

        # One-time pre-transpose AND pre-pad of the static parameter to (Kp, Np):
        # the per-call path never touches the weight again.
        wt = jnp.asarray(self.weight.T)
        if (Kp, Np) != (in_features, out_features):
            wt = jnp.pad(wt, ((0, Kp - in_features), (0, Np - out_features)))
        self.weight_t_padded = wt
        self.bias = None  # TODO(synk): fp8 weight path (act_quant / weight_dequant / fp8_gemm) not implemented; bf16 path only.

    def __call__(self, x):
        return pallas_linear(
            x,
            self.weight_t_padded,
            n_valid=self.out_features,
            tm=self._tm,
            tn=self._tn,
            tk=self._tk,
            vmem_limit=self._vmem_limit,
            multi_core=self._multi_core,
        )


if __name__ == "__main__":
    key = jax.random.PRNGKey(0)
    kx, kw = jax.random.split(key)

    batch, seq = 2, 8
    in_features, out_features = 128, 256

    x = jax.random.normal(kx, (batch, seq, in_features), jnp.float32).astype(jnp.bfloat16)
    layer = LinearPallas(in_features, out_features, bias=False, key=kw)

    y = jax.block_until_ready(layer(x))

    # Reference check in plain JAX (same math: x @ W^T with f32 accumulation).
    ref = jnp.dot(
        x.astype(jnp.float32), layer.weight.astype(jnp.float32).T
    ).astype(jnp.bfloat16)
    assert y.shape == (batch, seq, out_features)
    assert y.dtype == jnp.bfloat16
    err = float(jnp.max(jnp.abs(y.astype(jnp.float32) - ref.astype(jnp.float32))))
    assert err < 1e-1, f"max abs err too large: {err}"

    # Also exercise a non-divisible M (decode-style shape) to verify the padding path.
    x_odd = jax.random.normal(kx, (3, in_features), jnp.float32).astype(jnp.bfloat16)
    y_odd = jax.block_until_ready(layer(x_odd))
    ref_odd = jnp.dot(
        x_odd.astype(jnp.float32), layer.weight.astype(jnp.float32).T
    ).astype(jnp.bfloat16)
    err_odd = float(jnp.max(jnp.abs(y_odd.astype(jnp.float32) - ref_odd.astype(jnp.float32))))
    assert y_odd.shape == (3, out_features)
    assert err_odd < 1e-1, f"max abs err (odd M) too large: {err_odd}"

    print("KERNEL_OK")
</pallas_src>

<mosaic_0001>
module attributes {stable_mosaic.version = 11 : i64} {
  func.func @_linear_kernel(%arg0: i32, %arg1: i32, %arg2: i32, %arg3: memref<16x128xbf16, #tpu.memory_space<vmem>>, %arg4: memref<128x256xbf16, #tpu.memory_space<vmem>>, %arg5: memref<16x256xbf16, #tpu.memory_space<vmem>>, %arg6: memref<16x256xf32, #tpu.memory_space<vmem>>) attributes {dimension_semantics = [#tpu.dimension_semantics<parallel>, #tpu.dimension_semantics<parallel>, #tpu.dimension_semantics<arbitrary>], iteration_bounds = array<i64: 1, 1, 1>, scalar_prefetch = 0 : i64, scratch_operands = 1 : i64, tpu.core_type = #tpu.core_type<tc>, window_params = [{transform_indices = @transform_0, window_bounds = array<i64: 16, 128>}, {transform_indices = @transform_1, window_bounds = array<i64: 128, 256>}, {transform_indices = @transform_2, window_bounds = array<i64: 16, 256>}]} {
    %c0 = arith.constant 0 : index
    %c0_0 = arith.constant 0 : index
    %0 = vector.load %arg3[%c0, %c0_0] : memref<16x128xbf16, #tpu.memory_space<vmem>>, vector<16x128xbf16>
    %c0_1 = arith.constant 0 : index
    %c0_2 = arith.constant 0 : index
    %1 = vector.load %arg4[%c0_1, %c0_2] : memref<128x256xbf16, #tpu.memory_space<vmem>>, vector<128x256xbf16>
    %cst = arith.constant dense<0.000000e+00> : vector<16x256xf32>
    %2 = tpu.matmul %0, %1, %cst {dimension_numbers = #tpu.dot_dimension_numbers<[1], [0], [0], [1], [0, 0, 1, 1], [], []>} : vector<16x128xbf16>, vector<128x256xbf16>, vector<16x256xf32> -> vector<16x256xf32>
    %c0_i32 = arith.constant 0 : i32
    %3 = arith.cmpi eq, %arg2, %c0_i32 : i32
    %4 = arith.extui %3 : i1 to i32
    %c0_i32_3 = arith.constant 0 : i32
    %5 = arith.cmpi ne, %4, %c0_i32_3 : i32
    scf.if %5 {
      %c0_8 = arith.constant 0 : index
      %c0_9 = arith.constant 0 : index
      %12 = vector.load %arg6[%c0_8, %c0_9] : memref<16x256xf32, #tpu.memory_space<vmem>>, vector<16x256xf32>
      tpu.vector_store %arg6[%c0_8, %c0_9], %2 {strides = array<i32>} : memref<16x256xf32, #tpu.memory_space<vmem>>, vector<16x256xf32>,
    } else {
    }
    %c0_i32_4 = arith.constant 0 : i32
    %6 = arith.cmpi ne, %arg2, %c0_i32_4 : i32
    %7 = arith.extui %6 : i1 to i32
    %c0_i32_5 = arith.constant 0 : i32
    %8 = arith.cmpi ne, %7, %c0_i32_5 : i32
    scf.if %8 {
      %c0_8 = arith.constant 0 : index
      %c0_9 = arith.constant 0 : index
      %12 = vector.load %arg6[%c0_8, %c0_9] : memref<16x256xf32, #tpu.memory_space<vmem>>, vector<16x256xf32>
      %13 = arith.addf %12, %2 : vector<16x256xf32>
      %c0_10 = arith.constant 0 : index
      %c0_11 = arith.constant 0 : index
      %14 = vector.load %arg6[%c0_10, %c0_11] : memref<16x256xf32, #tpu.memory_space<vmem>>, vector<16x256xf32>
      tpu.vector_store %arg6[%c0_10, %c0_11], %13 {strides = array<i32>} : memref<16x256xf32, #tpu.memory_space<vmem>>, vector<16x256xf32>,
    } else {
    }
    %c0_i32_6 = arith.constant 0 : i32
    %9 = arith.cmpi eq, %arg2, %c0_i32_6 : i32
    %10 = arith.extui %9 : i1 to i32
    %c0_i32_7 = arith.constant 0 : i32
    %11 = arith.cmpi ne, %10, %c0_i32_7 : i32
    scf.if %11 {
      %c0_8 = arith.constant 0 : index
      %c0_9 = arith.constant 0 : index
      %12 = vector.load %arg6[%c0_8, %c0_9] : memref<16x256xf32, #tpu.memory_space<vmem>>, vector<16x256xf32>
      %13 = arith.truncf %12 : vector<16x256xf32> to vector<16x256xbf16>
      %c0_10 = arith.constant 0 : index
      %c0_11 = arith.constant 0 : index
      %14 = vector.load %arg5[%c0_10, %c0_11] : memref<16x256xbf16, #tpu.memory_space<vmem>>, vector<16x256xbf16>
      tpu.vector_store %arg5[%c0_10, %c0_11], %13 {strides = array<i32>} : memref<16x256xbf16, #tpu.memory_space<vmem>>, vector<16x256xbf16>,
    } else {
    }
    return
  }
  func.func @transform_0(%arg0: i32, %arg1: i32, %arg2: i32) -> (i32, i32) {
    %c0_i32 = arith.constant 0 : i32
    return %arg0, %arg2 : i32, i32
  }
  func.func @transform_1(%arg0: i32, %arg1: i32, %arg2: i32) -> (i32, i32) {
    %c0_i32 = arith.constant 0 : i32
    return %arg2, %arg1 : i32, i32
  }
  func.func @transform_2(%arg0: i32, %arg1: i32, %arg2: i32) -> (i32, i32) {
    %c0_i32 = arith.constant 0 : i32
    return %arg0, %arg1 : i32, i32
  }
}

</mosaic_0001>

<bundles_post_ra>
// kernel: _pallas_matmul_padded.1
= control target key start
LH: loop header
LB: loop body
LE: loop exit
PB: predicated region body
PF: predicated region fallthrough
CT: control target
= control target key end

     0   :  { %7 = vsyncpa [#allocation4], 0  ;;  %s442_s0 = inlined_call_operand.hbm [shape: bf16[16,128], index: 0, kind: input, shape index: {}]   ;;  %s443_s1 = inlined_call_operand.hbm [shape: bf16[128,256], index: 1, kind: input, shape index: {}]   ;;  %s444_s2 = inlined_call_operand.hbm [shape: bf16[16,256], index: 2, kind: output, shape index: {}]  }
   0x1   :  { %8 = vsyncpa [#allocation7], 0 }
   0x2   :  { %9 = vsyncpa [#allocation5], 0  ;;  %s377_s9 = smov [#allocation3]   ;;  %s305_s13 = scalar_lea.hbm %s442_s0, 128 }
   0x3   :  { %s15_s10 = sshll.u32 %s377_s9, 4  ;;  %p306_p0 = scmp.ne.s32.totalorder %s442_s0, %s305_s13  ;;  %s16_s10 = int_to_ptr.vmem [resolvable:$true] %s15_s10 }
   0x4   :  { %p309_p1 = scmp.lt.u32.totalorder %s305_s13, %s442_s0 }
   0x6   :  { %p311_p2 = pnand %p309_p1, %p306_p0 }
   0x8   :  { %314 = shalt.err (!%p311_p2)
}
   0x9   :  { %s315_s18 = scalar_lea.vmem %s16_s10, 128  ;;  %p320_p4 = scmp.lt.s32.totalorder %s16_s10, %s16_s10 }
   0xa   :  { %p316_p3 = scmp.ne.s32.totalorder %s16_s10, %s315_s18  ;;  %p321_p5 = scmp.lt.s32.totalorder %s315_s18, %s315_s18 }
   0xc   :  { %p322_p6 = por %p321_p5, %p320_p4 }
   0xe   :  { %p323_p7 = pnand %p322_p6, %p316_p3 }
  0x10   :  { %326 = shalt.err (!%p323_p7)
}
  0x11   :  { %s378_s19 = smov 64   ;;  %s379_s20 = smov 4  }
  0x12   :  { %21 = dma.hbm_to_vmem [thread:$0]  %s442_s0, 128, %s16_s10, [#allocation4], %s378_s19, %s378_s19, %s379_s20  }
  0x13   :  { %s380_s23 = smov [#allocation6]   ;;  %s327_s27 = scalar_lea.hbm %s443_s1, 2048 }
  0x14   :  { %s27_s24 = sshll.u32 %s380_s23, 4  ;;  %p328_p8 = scmp.ne.s32.totalorder %s443_s1, %s327_s27  ;;  %s28_s24 = int_to_ptr.vmem [resolvable:$true] %s27_s24 }
  0x15   :  { %p331_p9 = scmp.lt.u32.totalorder %s327_s27, %s443_s1 }
  0x17   :  { %p333_p10 = pnand %p331_p9, %p328_p8 }
  0x19   :  { %336 = shalt.err (!%p333_p10)
}
  0x1a   :  { %s337_s4 = scalar_lea.vmem %s28_s24, 2048  ;;  %p342_p12 = scmp.lt.s32.totalorder %s28_s24, %s28_s24 }
  0x1b   :  { %p338_p11 = scmp.ne.s32.totalorder %s28_s24, %s337_s4  ;;  %p343_p13 = scmp.lt.s32.totalorder %s337_s4, %s337_s4 }
  0x1d   :  { %p344_p0 = por %p343_p13, %p342_p12 }
  0x1f   :  { %p345_p1 = pnand %p344_p0, %p338_p11 }
  0x21   :  { %348 = shalt.err (!%p345_p1)
}
  0x22   :  { %s381_s0 = smov 128   ;;  %s382_s5 = smov 8  }
  0x23   :  { %33 = dma.hbm_to_vmem [thread:$0]  %s443_s1, 2048, %s28_s24, [#allocation7], %s381_s0, %s381_s0, %s382_s5  }
  0x24   :  { %371 = dma.done.wait [#allocation4], 128  }
  0x25   :  { %372 = vsyncadd [#allocation4], 4294967168 }
  0x26   :  { %373 = dma.done.wait [#allocation7], 2048  }
  0x27   :  { %374 = vsyncadd [#allocation7], 4294965248  ;;  %v383_v0 = vmov 0   ;;  %v280_v1 = vld [vmem:[#allocation6 + $0x4] ss:$8 sps:$4 sm:$0xff]   ;;  %v304_v17 = vld [vmem:[#allocation3] sm:$0xff]  }
  0x28   :  { %177 = vmatprep.mubr.bf16.mxu0 %v383_v0  ;;  %v282_v2 = vld [vmem:[#allocation6] ss:$8 sps:$4 sm:$0xff]   ;;  %145 = vmatprep.subr.bf16.mxu0 %v280_v1  ;;  %v283_v3 = vld [vmem:[#allocation6 + $0x14] ss:$8 sps:$4 sm:$0xff]   ;;  %v285_v4 = vld [vmem:[#allocation6 + $0x10] ss:$8 sps:$4 sm:$0xff]  }
  0x29   :  { %146 = vmatpush1.bf16.msra.mxu0 %v282_v2  ;;  %v286_v5 = vld [vmem:[#allocation6 + $0x24] ss:$8 sps:$4 sm:$0xff]   ;;  %v288_v6 = vld [vmem:[#allocation6 + $0x20] ss:$8 sps:$4 sm:$0xff]   ;;  %v289_v7 = vld [vmem:[#allocation6 + $0x34] ss:$8 sps:$4 sm:$0xff]  }
  0x2a   :  { %147 = vmatprep.subr.bf16.mxu0 %v283_v3  ;;  %v291_v8 = vld [vmem:[#allocation6 + $0x30] ss:$8 sps:$4 sm:$0xff]   ;;  %v292_v9 = vld [vmem:[#allocation6 + $0x44] ss:$8 sps:$4 sm:$0xff]   ;;  %v294_v10 = vld [vmem:[#allocation6 + $0x40] ss:$8 sps:$4 sm:$0xff]  }
  0x2b   :  { %v295_v11 = vld [vmem:[#allocation6 + $0x54] ss:$8 sps:$4 sm:$0xff]   ;;  %v297_v12 = vld [vmem:[#allocation6 + $0x50] ss:$8 sps:$4 sm:$0xff]   ;;  %v298_v13 = vld [vmem:[#allocation6 + $0x64] ss:$8 sps:$4 sm:$0xff]  }
  0x2c   :  { %v300_v14 = vld [vmem:[#allocation6 + $0x60] ss:$8 sps:$4 sm:$0xff]   ;;  %v301_v15 = vld [vmem:[#allocation6 + $0x74] ss:$8 sps:$4 sm:$0xff]   ;;  %v303_v16 = vld [vmem:[#allocation6 + $0x70] ss:$8 sps:$4 sm:$0xff]  }
  0x2d   :  { %148 = vmatpush1.bf16.msra.mxu0 %v285_v4  ;;  %s384_s1 = smov [#allocation8]  }
  0x2e   :  { %149 = vmatprep.subr.bf16.mxu0 %v286_v5  ;;  %s238_s8 = sshll.u32 %s384_s1, 4  ;;  %s239_s8 = int_to_ptr.vmem [resolvable:$true] %s238_s8 }
  0x2f   :  { %s349_s9 = scalar_lea.vmem %s239_s8, 256  ;;  %p354_p3 = scmp.lt.s32.totalorder %s239_s8, %s239_s8 }
  0x30   :  { %p350_p2 = scmp.ne.s32.totalorder %s239_s8, %s349_s9  ;;  %p355_p4 = scmp.lt.s32.totalorder %s349_s9, %s349_s9 }
  0x31   :  { %150 = vmatpush1.bf16.msra.mxu0 %v288_v6 }
  0x32   :  { %151 = vmatprep.subr.bf16.mxu0 %v289_v7  ;;  %p356_p5 = por %p355_p4, %p354_p3 }
  0x34   :  { %p357_p6 = pnand %p356_p5, %p350_p2 }
  0x35   :  { %152 = vmatpush1.bf16.msra.mxu0 %v291_v8 }
  0x36   :  { %153 = vmatprep.subr.bf16.mxu0 %v292_v9 }
  0x39   :  { %154 = vmatpush1.bf16.msra.mxu0 %v294_v10 }
  0x3a   :  { %155 = vmatprep.subr.bf16.mxu0 %v295_v11 }
  0x3d   :  { %156 = vmatpush1.bf16.msra.mxu0 %v297_v12 }
  0x3e   :  { %157 = vmatprep.subr.bf16.mxu0 %v298_v13 }
  0x41   :  { %158 = vmatpush1.bf16.msra.mxu0 %v300_v14 }
  0x42   :  { %159 = vmatprep.subr.bf16.mxu0 %v301_v15 }
  0x45   :  { %160 = vmatpush1.bf16.msra.mxu0 %v303_v16 }
  0x48   :  { %178 = vmatmul.mubr.bf16.vlgmr.msra.gmra.mrb[0].mxu0 %v304_v17 }
 0x11b   :  { %v179_v18 = vpop.f32.mrb[0].mxu0 }
 0x11c   :  { %v181_v19 = vpop.f32.mrb[1].mxu0 }
 0x11d   :  { %v270_v20 = vpack.c.bf16 %v181_v19, %v179_v18  ;;  %v183_v21 = vpop.f32.mrb[2].mxu0 }
 0x11e   :  { %v185_v22 = vpop.f32.mrb[3].mxu0 }
 0x11f   :  { %231 = vst [vmem:[#allocation8] sm:$0xff] %v270_v20  ;;  %v271_v23 = vpack.c.bf16 %v185_v22, %v183_v21 }
 0x121   :  { %232 = vst [vmem:[#allocation8 + $0x8] sm:$0xff] %v271_v23 }
 0x122   :  { %360 = shalt.err (!%p357_p6)
}
 0x123   :  { %s361_s12 = scalar_lea.hbm %s444_s2, 256 }
 0x124   :  { %p362_p7 = scmp.ne.s32.totalorder %s444_s2, %s361_s12  ;;  %p365_p8 = scmp.lt.u32.totalorder %s361_s12, %s444_s2 }
 0x126   :  { %p367_p9 = pnand %p365_p8, %p362_p7 }
 0x128   :  { %370 = shalt.err (!%p367_p9)
}
 0x129   :  { %244 = dma.vmem_to_hbm [thread:$0]  %s239_s8, 256, %s444_s2, [#allocation5], %s381_s0, %s381_s0, %s382_s5  }
 0x12a   :  { %375 = dma.done.wait [#allocation5], 256  }
 0x12b   :  { %376 = vsyncadd [#allocation5], 4294967040 }
 0x12c   :  { %248 = vsyncpa [#allocation4], 1 }
 0x12d   :  { %249 = vsyncpa [#allocation7], 1 }
 0x12e   :  { %250 = vsyncpa [#allocation5], 1 }

</bundles_post_ra>
